<compile_context>
chip_gen: v6e
topology: v6e:2x2x1
jax: 0.10.0
libtpu: 0.0.40
codegen_flags: <defaults>
</compile_context>

<pallas_src>
import functools

import jax
import jax.numpy as jnp
from jax.experimental import pallas as pl
from jax.experimental.pallas import tpu as pltpu


def _round_up(x, m):
    return (x + m - 1) // m * m


def _cdiv(a, b):
    return (a + b - 1) // b


def _select_tiles(batch, in_features, out_features, tm, tn, tk):
    """Cap tiles at the padded problem dims; keep both TCs busy on small batch."""
    tm = min(tm, _round_up(batch, 8))
    n_pad = _round_up(out_features, 128)
    k_pad = _round_up(in_features, 128)
    tn = min(tn, n_pad)
    tk = min(tk, k_pad)
    # Megacore (v7x has 2 TensorCores): if M collapses to one block, make sure
    # the N "parallel" axis has at least 2 blocks so one core does not idle.
    if _cdiv(batch, tm) == 1 and n_pad >= 512 and _cdiv(n_pad, tn) < 2:
        tn = _round_up(_cdiv(n_pad, 2), 128)
    return tm, tn, tk


def _vmem_limit_bytes(tm, tn, tk, in_itemsize, out_itemsize):
    # double-buffered x / w / bias / out tiles + f32 accumulator scratch + headroom
    bufs = 2 * (tm * tk * in_itemsize + tk * tn * in_itemsize
                + tn * 4 + tm * tn * out_itemsize)
    acc = tm * tn * 4
    limit = int(1.25 * (bufs + acc)) + (4 << 20)
    limit = max(limit, 32 << 20)      # raise v5e's 16 MiB scoped default
    return min(limit, 56 << 20)       # stay under v7x's 64 MiB per TensorCore


def linear_kernel(x_ref, w_ref, b_ref, o_ref, acc_ref):
    # x_ref: (tm, tk)   w_ref: (tk, tn)  pre-transposed -> plain MXU dot, no XLU
    # b_ref: (1, tn) f32   o_ref: (tm, tn)   acc_ref: (tm, tn) f32 VMEM scratch
    k = pl.program_id(2)

    @pl.when(k == 0)
    def _():
        # Seed the accumulator with the bias: removes a VPU add pass from the epilogue.
        acc_ref[...] = jnp.broadcast_to(b_ref[...], acc_ref.shape)

    acc_ref[...] += jnp.dot(x_ref[...], w_ref[...],
                            preferred_element_type=jnp.float32)

    @pl.when(k == pl.num_programs(2) - 1)
    def _():
        o_ref[...] = acc_ref[...].astype(o_ref.dtype)


def prepare_linear_params(weight, bias, *, batch_hint,
                          tm=256, tn=512, tk=2048, compute_dtype=None):
    """One-time weight transpose / pad / cast, outside the per-call hot path.

    weight: (out_features, in_features) in PyTorch nn.Linear layout.
    """
    out_features, in_features = weight.shape
    tm, tn, tk = _select_tiles(batch_hint, in_features, out_features, tm, tn, tk)
    K = _round_up(in_features, tk)
    N = _round_up(out_features, tn)

    w_t = weight.T                                   # (in, out): plain NN matmul
    if compute_dtype is not None:
        w_t = w_t.astype(compute_dtype)
    if (K, N) != (in_features, out_features):
        w_t = jnp.pad(w_t, ((0, K - in_features), (0, N - out_features)))

    b2d = bias.astype(jnp.float32).reshape(1, out_features)
    if N != out_features:
        b2d = jnp.pad(b2d, ((0, 0), (0, N - out_features)))

    return dict(weight_t=w_t, bias2d=b2d, tm=tm, tn=tn, tk=tk,
                in_features=in_features, out_features=out_features,
                compute_dtype=compute_dtype)


@functools.partial(jax.jit,
                   static_argnames=("tm", "tn", "tk", "in_features",
                                    "out_features", "compute_dtype"))
def _linear_forward(x, weight_t, bias2d, *, tm, tn, tk,
                    in_features, out_features, compute_dtype):
    B, IN = x.shape
    assert IN == in_features, "in_features mismatch"
    K, N = weight_t.shape
    M = _round_up(B, tm)

    out_dtype = x.dtype
    xc = x if compute_dtype is None else x.astype(compute_dtype)
    if (M, K) != (B, IN):
        xc = jnp.pad(xc, ((0, M - B), (0, K - IN)))

    grid = (M // tm, N // tn, K // tk)

    in_item = jnp.dtype(xc.dtype).itemsize
    out_item = jnp.dtype(out_dtype).itemsize
    cost = pl.CostEstimate(
        flops=2 * M * N * K,
        transcendentals=0,
        # x is re-read once per N block, the weight once per M block.
        bytes_accessed=(M * K * grid[1] + K * N * grid[0]) * in_item
                        + M * N * out_item + N * 4,
    )

    out = pl.pallas_call(
        linear_kernel,
        out_shape=jax.ShapeDtypeStruct((M, N), out_dtype),
        grid=grid,
        in_specs=[
            pl.BlockSpec((tm, tk), lambda i, j, k: (i, k)),   # x tile
            pl.BlockSpec((tk, tn), lambda i, j, k: (k, j)),   # weight.T tile
            pl.BlockSpec((1, tn), lambda i, j, k: (0, j)),    # bias tile (f32)
        ],
        out_specs=pl.BlockSpec((tm, tn), lambda i, j, k: (i, j)),
        scratch_shapes=[pltpu.VMEM((tm, tn), jnp.float32)],
        compiler_params=pltpu.CompilerParams(
            dimension_semantics=("parallel", "parallel", "arbitrary"),
            vmem_limit_bytes=_vmem_limit_bytes(tm, tn, tk, in_item, out_item),
        ),
        cost_estimate=cost,
    )(xc, weight_t, bias2d)

    return out[:B, :out_features]


def linear_forward(x, params):
    """y = x @ weight.T + bias with params from prepare_linear_params."""
    return _linear_forward(
        x, params["weight_t"], params["bias2d"],
        tm=params["tm"], tn=params["tn"], tk=params["tk"],
        in_features=params["in_features"], out_features=params["out_features"],
        compute_dtype=params["compute_dtype"])


if __name__ == "__main__":
    # --- Small case matching nn.Linear(in_features=32, out_features=16), batch=8 ---
    batch, in_features, out_features = 8, 32, 16
    kx, kw, kb = jax.random.split(jax.random.PRNGKey(0), 3)
    x = jax.random.normal(kx, (batch, in_features), dtype=jnp.float32)
    bound = 1.0 / jnp.sqrt(jnp.float32(in_features))
    weight = jax.random.uniform(kw, (out_features, in_features),
                                minval=-bound, maxval=bound, dtype=jnp.float32)
    bias = jax.random.uniform(kb, (out_features,),
                              minval=-bound, maxval=bound, dtype=jnp.float32)

    params = prepare_linear_params(weight, bias, batch_hint=batch)
    y = linear_forward(x, params)
    jax.block_until_ready(y)
    assert y.shape == (batch, out_features)
    y_ref = x @ weight.T + bias
    assert jnp.allclose(y, y_ref, atol=1e-5, rtol=1e-5), "mismatch (small, f32)"

    # --- Multi-tile case: exercises K reduction, epilogue, and parallel N axis ---
    B2, IN2, OUT2 = 256, 4096, 1024
    k2x, k2w, k2b = jax.random.split(jax.random.PRNGKey(1), 3)
    x2 = jax.random.normal(k2x, (B2, IN2), dtype=jnp.float32)
    bound2 = 1.0 / jnp.sqrt(jnp.float32(IN2))
    w2 = jax.random.uniform(k2w, (OUT2, IN2), minval=-bound2, maxval=bound2,
                            dtype=jnp.float32)
    b2 = jax.random.uniform(k2b, (OUT2,), minval=-bound2, maxval=bound2,
                            dtype=jnp.float32)
    y2_ref = x2 @ w2.T + b2

    params2 = prepare_linear_params(w2, b2, batch_hint=B2)
    y2 = linear_forward(x2, params2)
    jax.block_until_ready(y2)
    assert jnp.allclose(y2, y2_ref, atol=2e-2, rtol=2e-2), "mismatch (tiled, f32)"

    # --- Same problem with bf16 operands (f32 accumulation): halves HBM traffic ---
    params2_bf16 = prepare_linear_params(w2, b2, batch_hint=B2,
                                         compute_dtype=jnp.bfloat16)
    y2_bf16 = linear_forward(x2, params2_bf16)
    jax.block_until_ready(y2_bf16)
    assert jnp.allclose(y2_bf16, y2_ref, atol=5e-2, rtol=5e-2), "mismatch (tiled, bf16)"

    print("KERNEL_OK")
</pallas_src>

<mosaic_0001>
module attributes {stable_mosaic.version = 11 : i64} {
  func.func @linear_kernel(%arg0: i32, %arg1: i32, %arg2: i32, %arg3: memref<8x128xf32, #tpu.memory_space<vmem>>, %arg4: memref<128x128xf32, #tpu.memory_space<vmem>>, %arg5: memref<1x128xf32, #tpu.memory_space<vmem>>, %arg6: memref<8x128xf32, #tpu.memory_space<vmem>>, %arg7: memref<8x128xf32, #tpu.memory_space<vmem>>) attributes {dimension_semantics = [#tpu.dimension_semantics<parallel>, #tpu.dimension_semantics<parallel>, #tpu.dimension_semantics<arbitrary>], iteration_bounds = array<i64: 1, 1, 1>, scalar_prefetch = 0 : i64, scratch_operands = 1 : i64, tpu.core_type = #tpu.core_type<tc>, window_params = [{transform_indices = @transform_0, window_bounds = array<i64: 8, 128>}, {transform_indices = @transform_1, window_bounds = array<i64: 128, 128>}, {transform_indices = @transform_2, window_bounds = array<i64: 1, 128>}, {transform_indices = @transform_3, window_bounds = array<i64: 8, 128>}]} {
    %c0_i32 = arith.constant 0 : i32
    %0 = arith.cmpi eq, %arg2, %c0_i32 : i32
    %1 = arith.extui %0 : i1 to i32
    %c0_i32_0 = arith.constant 0 : i32
    %2 = arith.cmpi ne, %1, %c0_i32_0 : i32
    scf.if %2 {
      %c0_10 = arith.constant 0 : index
      %c0_11 = arith.constant 0 : index
      %12 = vector.load %arg5[%c0_10, %c0_11] : memref<1x128xf32, #tpu.memory_space<vmem>>, vector<1x128xf32>
      %13 = vector.shape_cast %12 : vector<1x128xf32> to vector<1x128xf32>
      %14 = vector.broadcast %13 : vector<1x128xf32> to vector<8x128xf32>
      %c0_12 = arith.constant 0 : index
      %c0_13 = arith.constant 0 : index
      %15 = vector.load %arg7[%c0_12, %c0_13] : memref<8x128xf32, #tpu.memory_space<vmem>>, vector<8x128xf32>
      tpu.vector_store %arg7[%c0_12, %c0_13], %14 {strides = array<i32>} : memref<8x128xf32, #tpu.memory_space<vmem>>, vector<8x128xf32>,
    } else {
    }
    %c0 = arith.constant 0 : index
    %c0_1 = arith.constant 0 : index
    %3 = vector.load %arg7[%c0, %c0_1] : memref<8x128xf32, #tpu.memory_space<vmem>>, vector<8x128xf32>
    %c0_2 = arith.constant 0 : index
    %c0_3 = arith.constant 0 : index
    %4 = vector.load %arg3[%c0_2, %c0_3] : memref<8x128xf32, #tpu.memory_space<vmem>>, vector<8x128xf32>
    %c0_4 = arith.constant 0 : index
    %c0_5 = arith.constant 0 : index
    %5 = vector.load %arg4[%c0_4, %c0_5] : memref<128x128xf32, #tpu.memory_space<vmem>>, vector<128x128xf32>
    %cst = arith.constant dense<0.000000e+00> : vector<8x128xf32>
    %6 = tpu.matmul %4, %5, %cst {dimension_numbers = #tpu.dot_dimension_numbers<[1], [0], [0], [1], [0, 0, 1, 1], [], []>} : vector<8x128xf32>, vector<128x128xf32>, vector<8x128xf32> -> vector<8x128xf32>
    %7 = arith.addf %3, %6 : vector<8x128xf32>
    %c0_6 = arith.constant 0 : index
    %c0_7 = arith.constant 0 : index
    %8 = vector.load %arg7[%c0_6, %c0_7] : memref<8x128xf32, #tpu.memory_space<vmem>>, vector<8x128xf32>
    tpu.vector_store %arg7[%c0_6, %c0_7], %7 {strides = array<i32>} : memref<8x128xf32, #tpu.memory_space<vmem>>, vector<8x128xf32>,
    %c0_i32_8 = arith.constant 0 : i32
    %9 = arith.cmpi eq, %arg2, %c0_i32_8 : i32
    %10 = arith.extui %9 : i1 to i32
    %c0_i32_9 = arith.constant 0 : i32
    %11 = arith.cmpi ne, %10, %c0_i32_9 : i32
    scf.if %11 {
      %c0_10 = arith.constant 0 : index
      %c0_11 = arith.constant 0 : index
      %12 = vector.load %arg7[%c0_10, %c0_11] : memref<8x128xf32, #tpu.memory_space<vmem>>, vector<8x128xf32>
      %c0_12 = arith.constant 0 : index
      %c0_13 = arith.constant 0 : index
      %13 = vector.load %arg6[%c0_12, %c0_13] : memref<8x128xf32, #tpu.memory_space<vmem>>, vector<8x128xf32>
      tpu.vector_store %arg6[%c0_12, %c0_13], %12 {strides = array<i32>} : memref<8x128xf32, #tpu.memory_space<vmem>>, vector<8x128xf32>,
    } else {
    }
    return
  }
  func.func @transform_0(%arg0: i32, %arg1: i32, %arg2: i32) -> (i32, i32) {
    %c0_i32 = arith.constant 0 : i32
    return %arg0, %arg2 : i32, i32
  }
  func.func @transform_1(%arg0: i32, %arg1: i32, %arg2: i32) -> (i32, i32) {
    %c0_i32 = arith.constant 0 : i32
    return %arg2, %arg1 : i32, i32
  }
  func.func @transform_2(%arg0: i32, %arg1: i32, %arg2: i32) -> (i32, i32) {
    %c0_i32 = arith.constant 0 : i32
    %c0_i32_0 = arith.constant 0 : i32
    return %c0_i32, %arg1 : i32, i32
  }
  func.func @transform_3(%arg0: i32, %arg1: i32, %arg2: i32) -> (i32, i32) {
    %c0_i32 = arith.constant 0 : i32
    return %arg0, %arg1 : i32, i32
  }
}

</mosaic_0001>

<bundles_post_ra>
// kernel: _linear_forward.1
= control target key start
LH: loop header
LB: loop body
LE: loop exit
PB: predicated region body
PF: predicated region fallthrough
CT: control target
= control target key end

     0   :  { %8 = vsyncpa [#allocation4], 0  ;;  %s292_s0 = inlined_call_operand.vmem [shape: f32[8,128], index: 0, kind: input, shape index: {}]   ;;  %s293_s1 = inlined_call_operand.hbm [shape: f32[128,128], index: 1, kind: input, shape index: {}]   ;;  %s294_s2 = inlined_call_operand.vmem [shape: f32[1,128], index: 2, kind: input, shape index: {}]   ;;  %s295_s3 = inlined_call_operand.hbm [shape: f32[8,128], index: 3, kind: output, shape index: {}]  }
   0x1   :  { %9 = vsyncpa [#allocation5], 0  ;;  %s254_s12 = smov [#allocation3]  }
   0x2   :  { %s17_s13 = sshll.u32 %s254_s12, 4  ;;  %s18_s13 = int_to_ptr.vmem [resolvable:$true] %s17_s13 }
   0x3   :  { %s218_s14 = scalar_lea.vmem %s18_s13, 2048  ;;  %p223_p1 = scmp.lt.s32.totalorder %s18_s13, %s18_s13 }
   0x4   :  { %p219_p0 = scmp.ne.s32.totalorder %s18_s13, %s218_s14  ;;  %p224_p2 = scmp.lt.s32.totalorder %s218_s14, %s218_s14 }
   0x6   :  { %p225_p3 = por %p224_p2, %p223_p1 }
   0x8   :  { %p226_p4 = pnand %p225_p3, %p219_p0 }
   0xa   :  { %229 = shalt.err (!%p226_p4)
}
   0xb   :  { %s255_s15 = smov 128   ;;  %s256_s16 = smov 8  }
   0xc   :  { %23 = dma.hbm_to_vmem [thread:$0]  %s293_s1, 2048, %s18_s13, [#allocation4], %s255_s15, %s255_s15, %s256_s16  }
   0xd   :  { %250 = dma.done.wait [#allocation4], 2048  }
   0xe   :  { %251 = vsyncadd [#allocation4], 4294965248  ;;  %v257_v0 = vmov 0.0   ;;  %vm258_vm0 = vmmov 0   ;;  %v58_v1 = vld [vmem:[#allocation3 + $0x78] sm:$0xff]  ;;  %v57_v2 = vld [vmem:[#allocation3 + $0x70] sm:$0xff] }
   0xf   :  { %169 = vmatprep.subr.mxu0 %v257_v0  ;;  %201 = vmatprep.mubr.msk.f32.mxu0 %vm258_vm0, %v257_v0  ;;  %v56_v3 = vld [vmem:[#allocation3 + $0x68] sm:$0xff]  ;;  %v55_v4 = vld [vmem:[#allocation3 + $0x60] sm:$0xff]  ;;  %v54_v5 = vld [vmem:[#allocation3 + $0x58] sm:$0xff]  ;;  %s259_s22 = smov [#allocation6]  }
  0x10   :  { %170 = vmatpush3.msra.mxu0 %v58_v1  ;;  %v53_v6 = vld [vmem:[#allocation3 + $0x50] sm:$0xff]  ;;  %v52_v7 = vld [vmem:[#allocation3 + $0x48] sm:$0xff]  ;;  %v51_v8 = vld [vmem:[#allocation3 + $0x40] sm:$0xff]  ;;  %s142_s23 = sshll.u32 %s259_s22, 4  ;;  %s143_s23 = int_to_ptr.vmem [resolvable:$true] %s142_s23 }
  0x11   :  { %171 = vmatprep.subr.mxu0 %v257_v0  ;;  %v50_v9 = vld [vmem:[#allocation3 + $0x38] sm:$0xff]  ;;  %v49_v10 = vld [vmem:[#allocation3 + $0x30] sm:$0xff]  ;;  %v48_v11 = vld [vmem:[#allocation3 + $0x28] sm:$0xff]  ;;  %s230_s24 = scalar_lea.vmem %s143_s23, 128  ;;  %p235_p6 = scmp.lt.s32.totalorder %s143_s23, %s143_s23 }
  0x12   :  { %172 = vmatpush3.msra.mxu0 %v57_v2  ;;  %v47_v12 = vld [vmem:[#allocation3 + $0x20] sm:$0xff]  ;;  %v46_v13 = vld [vmem:[#allocation3 + $0x18] sm:$0xff]  ;;  %v45_v14 = vld [vmem:[#allocation3 + $0x10] sm:$0xff]  ;;  %p231_p5 = scmp.ne.s32.totalorder %s143_s23, %s230_s24  ;;  %p236_p7 = scmp.lt.s32.totalorder %s230_s24, %s230_s24 }
  0x13   :  { %173 = vmatprep.subr.mxu0 %v257_v0  ;;  %v44_v15 = vld [vmem:[#allocation3 + $0x8] sm:$0xff]  ;;  %v43_v16 = vld [vmem:[#allocation3] sm:$0xff] }
  0x14   :  { %174 = vmatpush3.msra.mxu0 %v56_v3  ;;  %v42_v17 = vld [vmem:[%s292_s0] sm:$0xff]  ;;  %p237_p8 = por %p236_p7, %p235_p6 }
  0x15   :  { %175 = vmatprep.subr.mxu0 %v257_v0  ;;  %v151_v18 = vld [vmem:[%s294_s2] ss:$0 sm:$0xff] }
  0x16   :  { %176 = vmatpush3.msra.mxu0 %v55_v4  ;;  %p238_p9 = pnand %p237_p8, %p231_p5 }
  0x17   :  { %177 = vmatprep.subr.mxu0 %v257_v0 }
  0x18   :  { %178 = vmatpush3.msra.mxu0 %v54_v5 }
  0x19   :  { %179 = vmatprep.subr.mxu0 %v257_v0 }
  0x1a   :  { %180 = vmatpush3.msra.mxu0 %v53_v6 }
  0x1b   :  { %181 = vmatprep.subr.mxu0 %v257_v0 }
  0x1c   :  { %182 = vmatpush3.msra.mxu0 %v52_v7 }
  0x1d   :  { %183 = vmatprep.subr.mxu0 %v257_v0 }
  0x1e   :  { %184 = vmatpush3.msra.mxu0 %v51_v8 }
  0x1f   :  { %185 = vmatprep.subr.mxu0 %v257_v0 }
  0x20   :  { %186 = vmatpush3.msra.mxu0 %v50_v9 }
  0x21   :  { %187 = vmatprep.subr.mxu0 %v257_v0 }
  0x22   :  { %188 = vmatpush3.msra.mxu0 %v49_v10 }
  0x23   :  { %189 = vmatprep.subr.mxu0 %v257_v0 }
  0x24   :  { %190 = vmatpush3.msra.mxu0 %v48_v11 }
  0x25   :  { %191 = vmatprep.subr.mxu0 %v257_v0 }
  0x26   :  { %192 = vmatpush3.msra.mxu0 %v47_v12 }
  0x27   :  { %193 = vmatprep.subr.mxu0 %v257_v0 }
  0x28   :  { %194 = vmatpush3.msra.mxu0 %v46_v13 }
  0x29   :  { %195 = vmatprep.subr.mxu0 %v257_v0 }
  0x2a   :  { %196 = vmatpush3.msra.mxu0 %v45_v14 }
  0x2b   :  { %197 = vmatprep.subr.mxu0 %v257_v0 }
  0x2c   :  { %198 = vmatpush3.msra.mxu0 %v44_v15 }
  0x2d   :  { %199 = vmatprep.subr.mxu0 %v257_v0 }
  0x2e   :  { %200 = vmatpush3.msra.mxu0 %v43_v16 }
  0x2f   :  { %202 = vmatmul.mubr.f32.vlgmr.msra.gmra.mxu0 %v42_v17 }
  0xef   :  { %v125_v19 = vpop.f32.mrf.mxu0 }
  0xf0   :  { %v129_v20 = vadd.f32 %v151_v18, %v125_v19 }
  0xf1   :  { %v203_v21 = vpop.f32.mrf.mxu0 }
  0xf2   :  { %135 = vst [vmem:[#allocation6] sm:$0xff] %v129_v20 }
  0xf3   :  { %241 = shalt.err (!%p238_p9)
}
  0xf4   :  { %145 = dma.vmem_to_hbm [thread:$0]  %s143_s23, 128, %s295_s3, [#allocation5]  }
  0xf5   :  { %252 = dma.done.wait [#allocation5], 128  }
  0xf6   :  { %253 = vsyncadd [#allocation5], 4294967168 }
  0xf7   :  { %149 = vsyncpa [#allocation4], 1 }
  0xf8   :  { %150 = vsyncpa [#allocation5], 1 }

</bundles_post_ra>
